<compile_context>
chip_gen: v6e
topology: v6e:2x2x1
jax: 0.10.0
libtpu: 0.0.40
codegen_flags: <defaults>
</compile_context>

<pallas_src>
import jax
import jax.numpy as jnp
from jax.experimental import pallas as pl
from jax.experimental.pallas import tpu as pltpu


def _round_up(x, m):
    return ((x + m - 1) // m) * m


def _round_down(x, m):
    return (x // m) * m


def temporal_encoding_kernel(t_ref, w_ref, b_ref, o_ref):
    # t_ref: (tile_rows, 1), w_ref/b_ref: (1, dim), o_ref: (tile_rows, dim)
    t = t_ref[...].astype(jnp.float32)   # (tile_rows, 1)
    w = w_ref[...].astype(jnp.float32)   # (1, dim)
    b = b_ref[...].astype(jnp.float32)   # (1, dim)
    # Linear(1 -> dim) is a rank-1 outer product: VPU lane/sublane broadcast,
    # sin goes to the EUP.  f32 math, cast only at the store.
    o_ref[...] = jnp.sin(t * w + b).astype(o_ref.dtype)


def temporal_encoding(timestamps, weight, bias, *, out_dtype=None,
                      tile_rows=None, vmem_tile_budget_bytes=12 * 1024 * 1024,
                      min_grid_steps=4):
    """sin(Linear(1 -> dim)(timestamps)) -- TGAT temporal encoding.

    timestamps: (N, 1) or (N,) float
    weight:     (dim, 1)   -- PyTorch nn.Linear(1, dim).weight layout
    bias:       (dim,)
    out_dtype:  output dtype; default = timestamps.dtype.  jnp.bfloat16 halves
                HBM writeback on this writeback-bound kernel.
    tile_rows:  rows per grid step; default derived from the VMEM budget.
    """
    if timestamps.ndim == 1:
        timestamps = timestamps.reshape(-1, 1)
    N = timestamps.shape[0]
    dim = weight.shape[0]
    if out_dtype is None:
        out_dtype = timestamps.dtype
    out_dtype = jnp.dtype(out_dtype)
    out_itemsize = out_dtype.itemsize

    # Free (row-major) reshapes to a lane-friendly (1, dim) parameter layout.
    weight_row = weight.reshape(1, dim)   # == W.T
    bias_row = bias.reshape(1, dim)

    # ---- row-tile size from a VMEM budget ---------------------------------
    # Sublane alignment: 8 rows for 32-bit, 16 for bf16, 32 for 8-bit outputs.
    row_align = max(8, 32 // out_itemsize)
    lane_dim = _round_up(dim, 128)        # VMEM lane padding of the output block
    # Per-row VMEM cost, double-buffered (x2):
    #   512 B/row:   the (tile_rows, 1) f32 timestamp block is stored as full
    #                (8,128) VMEM tiles -> 128x lane inflation of the input.
    #   lane_dim*sz: output block, lane-padded in VMEM (HBM writeback is still
    #                exactly N*dim bytes).
    per_row_vmem = 2 * (512 + lane_dim * out_itemsize)
    if tile_rows is None:
        tile_rows = vmem_tile_budget_bytes // per_row_vmem
    tile_rows = max(row_align, _round_down(int(tile_rows), row_align))
    # Never bigger than needed to cover N once.
    tile_rows = min(tile_rows, _round_up(N, row_align))
    # Keep >= min_grid_steps so a v7x 2-TC part can shard the grid axis.
    tile_rows = min(tile_rows,
                    max(row_align,
                        _round_up(pl.cdiv(N, min_grid_steps), row_align)))

    grid = (pl.cdiv(N, tile_rows),)

    cost = pl.CostEstimate(
        flops=2 * N * dim,
        transcendentals=N * dim,
        bytes_accessed=(N * timestamps.dtype.itemsize
                        + dim * weight.dtype.itemsize
                        + dim * bias.dtype.itemsize
                        + N * dim * out_itemsize),
    )

    return pl.pallas_call(
        temporal_encoding_kernel,
        out_shape=jax.ShapeDtypeStruct((N, dim), out_dtype),
        grid_spec=pltpu.PrefetchScalarGridSpec(
            num_scalar_prefetch=0,
            grid=grid,
            in_specs=[
                pl.BlockSpec((tile_rows, 1), lambda i: (i, 0)),  # timestamps
                pl.BlockSpec((1, dim), lambda i: (0, 0)),        # weight (resident)
                pl.BlockSpec((1, dim), lambda i: (0, 0)),        # bias   (resident)
            ],
            out_specs=pl.BlockSpec((tile_rows, dim), lambda i: (i, 0)),
        ),
        compiler_params=pltpu.CompilerParams(
            dimension_semantics=("parallel",)),
        cost_estimate=cost,
    )(timestamps, weight_row, bias_row)


if __name__ == "__main__":
    key = jax.random.PRNGKey(0)
    k_t, k_w, k_b, k_t2 = jax.random.split(key, 4)

    # Small shapes consistent with the module: N events, dim-sized encoding.
    N, dim = 16, 32
    weight = jax.random.uniform(k_w, (dim, 1), jnp.float32, -1.0, 1.0)  # PyTorch layout
    bias = jax.random.uniform(k_b, (dim,), jnp.float32, -1.0, 1.0)
    timestamps = jax.random.uniform(k_t, (N, 1), jnp.float32, 0.0, 100.0)

    out = jax.block_until_ready(temporal_encoding(timestamps, weight, bias))
    ref = jnp.sin(timestamps @ weight.T + bias)
    assert out.shape == (N, dim) and out.dtype == timestamps.dtype
    assert jnp.allclose(out, ref, atol=1e-5, rtol=1e-5), "mismatch vs reference"

    # Ragged N + non-128 dim: exercises the masked last block / lane tail
    # (no row/lane padding, no trailing slice copy).
    N2, dim2 = 1037, 100
    ts2 = jax.random.uniform(k_t2, (N2, 1), jnp.float32, 0.0, 100.0)
    w2 = jax.random.uniform(k_w, (dim2, 1), jnp.float32, -1.0, 1.0)
    b2 = jax.random.uniform(k_b, (dim2,), jnp.float32, -1.0, 1.0)
    out2 = jax.block_until_ready(temporal_encoding(ts2, w2, b2))
    ref2 = jnp.sin(ts2 @ w2.T + b2)
    assert out2.shape == (N2, dim2)
    assert jnp.allclose(out2, ref2, atol=1e-5, rtol=1e-5), "mismatch (ragged)"

    # bf16 writeback path (f32 compute, cast only at the store).
    out3 = jax.block_until_ready(
        temporal_encoding(ts2, w2, b2, out_dtype=jnp.bfloat16))
    assert out3.shape == (N2, dim2) and out3.dtype == jnp.bfloat16
    assert jnp.allclose(out3.astype(jnp.float32), ref2, atol=2e-2), "mismatch (bf16)"

    print("KERNEL_OK")
</pallas_src>

<mosaic_0001>
module attributes {stable_mosaic.version = 11 : i64} {
  func.func @temporal_encoding_kernel(%arg0: i32, %arg1: memref<8x1xf32, #tpu.memory_space<vmem>>, %arg2: memref<1x32xf32, #tpu.memory_space<vmem>>, %arg3: memref<1x32xf32, #tpu.memory_space<vmem>>, %arg4: memref<8x32xf32, #tpu.memory_space<vmem>>) attributes {dimension_semantics = [#tpu.dimension_semantics<parallel>], iteration_bounds = array<i64: 2>, scalar_prefetch = 0 : i64, scratch_operands = 0 : i64, tpu.core_type = #tpu.core_type<tc>, window_params = [{transform_indices = @transform_0, window_bounds = array<i64: 8, 1>}, {pipeline_mode = #tpu.pipeline_mode<synchronous>, transform_indices = @transform_1, window_bounds = array<i64: 1, 32>}, {pipeline_mode = #tpu.pipeline_mode<synchronous>, transform_indices = @transform_2, window_bounds = array<i64: 1, 32>}, {transform_indices = @transform_3, window_bounds = array<i64: 8, 32>}]} {
    %c0 = arith.constant 0 : index
    %c0_0 = arith.constant 0 : index
    %0 = vector.load %arg1[%c0, %c0_0] : memref<8x1xf32, #tpu.memory_space<vmem>>, vector<8x1xf32>
    %c0_1 = arith.constant 0 : index
    %c0_2 = arith.constant 0 : index
    %1 = vector.load %arg2[%c0_1, %c0_2] : memref<1x32xf32, #tpu.memory_space<vmem>>, vector<1x32xf32>
    %c0_3 = arith.constant 0 : index
    %c0_4 = arith.constant 0 : index
    %2 = vector.load %arg3[%c0_3, %c0_4] : memref<1x32xf32, #tpu.memory_space<vmem>>, vector<1x32xf32>
    %3 = vector.broadcast %0 : vector<8x1xf32> to vector<8x32xf32>
    %4 = vector.broadcast %1 : vector<1x32xf32> to vector<8x32xf32>
    %5 = arith.mulf %3, %4 : vector<8x32xf32>
    %6 = vector.broadcast %2 : vector<1x32xf32> to vector<8x32xf32>
    %7 = arith.addf %5, %6 : vector<8x32xf32>
    %8 = math.sin %7 : vector<8x32xf32>
    %c0_5 = arith.constant 0 : index
    %c0_6 = arith.constant 0 : index
    %9 = vector.load %arg4[%c0_5, %c0_6] : memref<8x32xf32, #tpu.memory_space<vmem>>, vector<8x32xf32>
    tpu.vector_store %arg4[%c0_5, %c0_6], %8 {strides = array<i32>} : memref<8x32xf32, #tpu.memory_space<vmem>>, vector<8x32xf32>,
    return
  }
  func.func @transform_0(%arg0: i32) -> (i32, i32) {
    %c0_i32 = arith.constant 0 : i32
    %c0_i32_0 = arith.constant 0 : i32
    return %arg0, %c0_i32 : i32, i32
  }
  func.func @transform_1(%arg0: i32) -> (i32, i32) {
    %c0_i32 = arith.constant 0 : i32
    %c0_i32_0 = arith.constant 0 : i32
    %c0_i32_1 = arith.constant 0 : i32
    return %c0_i32, %c0_i32_0 : i32, i32
  }
  func.func @transform_2(%arg0: i32) -> (i32, i32) {
    %c0_i32 = arith.constant 0 : i32
    %c0_i32_0 = arith.constant 0 : i32
    %c0_i32_1 = arith.constant 0 : i32
    return %c0_i32, %c0_i32_0 : i32, i32
  }
  func.func @transform_3(%arg0: i32) -> (i32, i32) {
    %c0_i32 = arith.constant 0 : i32
    %c0_i32_0 = arith.constant 0 : i32
    return %arg0, %c0_i32 : i32, i32
  }
}

</mosaic_0001>

<bundles_post_ra>
// kernel: tpu_custom_call.1
= control target key start
LH: loop header
LB: loop body
LE: loop exit
PB: predicated region body
PF: predicated region fallthrough
CT: control target
= control target key end

     0   :  { %8 = vsyncpa [#allocation3], 0  ;;  %s648_s0 = inlined_call_operand.vmem [shape: f32[16,1], index: 0, kind: input, shape index: {}]   ;;  %s649_s1 = inlined_call_operand.vmem [shape: f32[1,32], index: 1, kind: input, shape index: {}]   ;;  %s650_s2 = inlined_call_operand.vmem [shape: f32[1,32], index: 2, kind: input, shape index: {}]   ;;  %s651_s3 = inlined_call_operand.hbm [shape: f32[16,32], index: 3, kind: output, shape index: {}]  }
   0x1   :  { %10 = vsyncpa [#allocation3 + $0x1], 0  ;;  %s528_s12 = smov 0   ;;  %s530_s13 = smov 0  }
   0x2   :  { %s532_s14 = smov 0   ;;  %s534_s15 = smov 0  }
   0x3 LB: > { %s549_s16 = sadd.s32 4294967295, %s498_s15   ;;  %s367_s17 = sadd.s32 4294967294, %s498_s15   ;;  %s498_s15 = sphi %s534_s15, %s657_s15   ;;  %s494_s14 = sphi %s532_s14, %s656_s14   ;;  %s490_s13 = sphi %s530_s13, %s655_s13   ;;  %s486_s12 = sphi %s528_s12, %s654_s12  }
   0x4   : > { %s553_s18 = sadd.s32 1, %s498_s15   ;;  %s91_s19 = sadd.s32 1, %s494_s14 }
   0x5   : > { %s88_s20 = ssub.s32 %s498_s15, %s553_s18  ;;  %p101_p0 = scmp.ne.s32.totalorder %s494_s14, %s490_s13 }
   0x6   : > { %p89_p1 = scmp.eq.s32.totalorder %s88_s20, 0  ;;  %p102_p2 = scmp.eq.s32.totalorder %s549_s16, 1 }
   0x7   : > { %p107_p3 = scmp.ne.s32.totalorder %s490_s13, %s486_s12  ;;  %p108_p4 = scmp.eq.s32.totalorder %s367_s17, 1 }
   0x8   : > { %s564_s21 = scalar_select %p89_p1, %s494_s14, %s91_s19  }
   0x9   : > { %p566_p5 = por %p102_p2, %p101_p0  ;;  %p570_p6 = por %p108_p4, %p107_p3 }
   0xa   : > { %p370_p7 = scmp.ge.s32.totalorder %s498_s15, 1  ;;  %p139_p8 = scmp.lt.s32.totalorder %s498_s15, 3 }
   0xc   : > { %p140_p9 = pnand %p370_p7, %p139_p8 }
   0xd   : > { %p162_p10 = scmp.lt.s32.totalorder (!%p140_p9), %s549_s16, 1  ;;  %s159_s6 = sand.u32 (!%p140_p9), 1, %s490_s13  }
   0xe   : > { %143 = sbr.rel (%p140_p9) target bundleno = 247 (0xf7), region = 32  ;;  %s371_s7 = sshll.u32 (!%p140_p9), %s159_s6, 3 }
   0xf   : > { %s380_s8 = sshll.u32 (!%p140_p9), %s549_s16, 7  ;;  %s161_s9 = scalar_lea.vmem (!%p140_p9), [#allocation2], %s371_s7 }
  0x10   : > { %s308_s10 = sshll.u32 (!%p140_p9), %s161_s9, 4  ;;  %s613_s19 = scalar_lea.hbm (!%p140_p9), %s651_s3, %s380_s8  ;;  %s309_s10 = int_to_ptr.vmem [resolvable:$true] %s308_s10 }
  0x11   : > { %s438_s20 = scalar_lea.vmem (!%p140_p9), %s309_s10, 128 }
  0x12   : > { %p439_p11 = scmp.ne.s32.totalorder (!%p140_p9), %s309_s10, %s438_s20 }
  0x13   : > { %v500_v0 = vmov 0   ;;  %s163_s24 = scalar_select %p162_p10, %s549_s16, 1  ;;  %v373_v2 = vld [vmem:[%s649_s1] ss:$0 sm:$0xff]  ;;  %v501_v17 = vmov 683565275  }
  0x14   : > { %433 = vset.pattern.permute.xlu0 %v500_v0  ;;  %v374_v3 = vld [vmem:[%s650_s2] ss:$0 sm:$0xff]  ;;  %v502_v19 = vmov 2475754826   ;;  %v503_v22 = vmov 2131351028   ;;  %p440_p12 = pnand %p439_p11, %p566_p5 }
  0x15   : > { %s372_s25 = sshll.u32 %s163_s24, 3  ;;  %v504_v25 = vmov 2102212464   ;;  %v505_v28 = vmov 920167782   ;;  %vm292_vm12 = vcmask 261120  }
  0x16   : > { %s165_s28 = scalar_lea.vmem %s648_s0, %s372_s25  ;;  %v506_v31 = vmov 1326507024   ;;  %s295_s16 = scalar_lea.sflag [#allocation3], %s159_s6 }
  0x17   : > { %v166_v1 = vld [vmem:[%s165_s28] sm:$0xff]  ;;  %p441_p13 = pneg %p440_p12  ;;  %s507_s24 = smov [#allocation2]  }
  0x18   : > { %171 = vperm.xlu0 %433, %v166_v1   ;;  %s442_s25 = sshll.u32 %s507_s24, 4  ;;  %s443_s25 = int_to_ptr.vmem [resolvable:$false] %s442_s25 }
  0x19   : > { %s444_s26 = scalar_lea.vmem %s443_s25, 256  ;;  %p445_p0 = scmp.lt.s32.totalorder %s309_s10, %s443_s25 }
  0x1a   : > { %p446_p1 = scmp.lt.s32.totalorder %s444_s26, %s438_s20 }
  0x1c   : > { %p447_p2 = por %p446_p1, %p445_p0 }
  0x1e   : > { %p448_p3 = pnand %p447_p2, %p441_p13 }
  0x93   : > { %v172_v4 = vpop.permute.xlu0 %171 }
  0x94   : > { %v180_v5 = vmul.f32 %v373_v2, %v172_v4 }
  0x96   : > { %v587_v6 = vadd.f32 %v374_v3, %v180_v5 }
  0x98   : > { %v191_v7 = vand.u32 2139095040, %v587_v6  ;;  %v188_v11 = vand.u32 2147483647, %v587_v6  ;;  %vm190_vm7 = vcmp.lt.s32.totalorder %v587_v6, 0  ;;  %vm280_vm13 = vweird.f32 %v587_v6 }
  0x9a   : > { %v192_v8 = vshrl.u32 %v191_v7, 23  ;;  %v195_v14 = vand.u32 8388607, %v188_v11  ;;  %vm189_vm8 = vcmp.le.f32.partialorder %v188_v11, 0.7853982 }
  0x9c   : > { %v375_v9 = vadd.s32 4294967169, %v192_v8  ;;  %v196_v33 = vor.u32 8388608, %v195_v14 }
  0x9e   : > { %v198_v10 = vadd.s32 1, %v375_v9  ;;  %v236_v47 = vshll.u32 %v196_v33, 8 }
  0xa0   : > { %vm199_vm0 = vcmp.gt.s32.totalorder %v198_v10, 0 }
  0xa1   : > { %v200_v12 = vsel %vm199_vm0, %v198_v10, 0 }
  0xa2   : > { %v202_v13 = vand.u32 31, %v200_v12  ;;  %v201_v16 = vshrl.u32 %v200_v12, 5 }
  0xa4   : > { %v203_v15 = vsub.s32 32, %v202_v13  ;;  %v205_v18 = vshll.u32 %v501_v17, %v202_v13  ;;  %v208_v20 = vshll.u32 %v502_v19, %v202_v13  ;;  %v211_v24 = vshll.u32 %v503_v22, %v202_v13 }
  0xa5   : > { %v214_v27 = vshll.u32 %v504_v25, %v202_v13  ;;  %v217_v30 = vshll.u32 %v505_v28, %v202_v13  ;;  %vm220_vm1 = vcmp.lt.s32.totalorder %v201_v16, 1  ;;  %vm223_vm2 = vcmp.lt.s32.totalorder %v201_v16, 4 }
  0xa6   : > { %v206_v21 = vshrl.u32 %v502_v19, %v203_v15  ;;  %v209_v23 = vshrl.u32 %v503_v22, %v203_v15  ;;  %v212_v26 = vshrl.u32 %v504_v25, %v203_v15  ;;  %v215_v29 = vshrl.u32 %v505_v28, %v203_v15 }
  0xa7   : > { %v218_v32 = vshrl.u32 %v506_v31, %v203_v15  ;;  %v204_v42 = vshrl.u32 %v501_v17, %v203_v15  ;;  %vm222_vm3 = vcmp.lt.s32.totalorder %v201_v16, 3  ;;  %vm221_vm4 = vcmp.lt.s32.totalorder %v201_v16, 2 }
  0xa8   : > { %v207_v34 = vor.u32 %v206_v21, %v205_v18  ;;  %v210_v35 = vor.u32 %v209_v23, %v208_v20  ;;  %v213_v36 = vor.u32 %v212_v26, %v211_v24  ;;  %v216_v37 = vor.u32 %v215_v29, %v214_v27 }
  0xa9   : > { %v219_v38 = vor.u32 %v218_v32, %v217_v30 }
  0xaa   : > { %v225_v39 = vsel %vm223_vm2, %v213_v36, 2102212464  ;;  %v228_v40 = vsel %vm220_vm1, %v207_v34, %v210_v35  ;;  %v232_v41 = vsel %vm220_vm1, %v210_v35, %v213_v36  ;;  %v229_v43 = vsel %vm223_vm2, %v216_v37, 920167782 }
  0xab   : > { %v233_v44 = vsel %vm223_vm2, %v219_v38, 1326507024  ;;  %v230_v45 = vsel %vm222_vm3, %v213_v36, %v229_v43  ;;  %v224_v48 = vsel %vm220_vm1, %v204_v42, %v207_v34  ;;  %v226_v49 = vsel %vm222_vm3, %v210_v35, %v225_v39 }
  0xac   : > { %v234_v46 = vsel %vm222_vm3, %v216_v37, %v233_v44  ;;  %v231_v50 = vsel %vm221_vm4, %v228_v40, %v230_v45  ;;  %v227_v56 = vsel %vm221_vm4, %v224_v48, %v226_v49 }
  0xad   : > { %v235_v51 = vsel %vm221_vm4, %v232_v41, %v234_v46  ;;  %v596_v54 = vmul.u32.u64.low %v236_v47, %v231_v50  ;;  %v597_v55 = vmul.u32.u64.high %v236_v47, %v231_v50, %v596_v54  ;;  %v243_v58 = vmul.u32 %v236_v47, %v227_v56 }
  0xae   : > { %v593_v52 = vmul.u32.u64.low %v236_v47, %v235_v51  ;;  %v594_v53 = vmul.u32.u64.high %v236_v47, %v235_v51, %v593_v52 }
  0xaf   : > { %v246_v57 = vadd.s32 1, %v597_v55 }
  0xb0   : > { %vm245_vm5 = vc.u32 %v594_v53, %v596_v54  ;;  %v244_v7 = vadd.s32 %v596_v54, %v594_v53 }
  0xb1   : > { %v247_v59 = vsel %vm245_vm5, %v246_v57, %v597_v55 }
  0xb2   : > { %v248_v60 = vadd.s32 %v247_v59, %v243_v58 }
  0xb4   : > { %v249_v61 = vadd.s32 536870912, %v248_v60 }
  0xb6   : > { %v250_v62 = vshrl.u32 %v249_v61, 30 }
  0xb8   : > { %v251_v63 = vshll.u32 %v250_v62, 30  ;;  %v274_v21 = vsub.s32 4, %v250_v62 }
  0xba   : > { %v252_v0 = vsub.s32 %v248_v60, %v251_v63  ;;  %v275_v24 = vsel %vm190_vm7, %v274_v21, %v250_v62 }
  0xbb   : > { %v277_v25 = vsel %vm189_vm8, 0, %v275_v24 }
  0xbc   : > { %v254_v1 = vsub.s32 0, %v252_v0  ;;  %v281_v26 = vadd.s32 3, %v277_v25 }
  0xbe   : > { %v376_v2 = vmin.u32 %v254_v1, %v252_v0  ;;  %v282_v27 = vand.u32 3, %v281_v26 }
  0xc0   : > { %v256_v3 = vclz %v376_v2  ;;  %vm287_vm9 = vcmp.eq.s32.totalorder %v282_v27, 2  ;;  %vm284_vm10 = vcmp.eq.s32.totalorder %v282_v27, 0  ;;  %vm283_vm11 = vcmp.lt.s32.totalorder %v282_v27, 2 }
  0xc2   : > { %v377_v4 = vadd.s32 4294967294, %v256_v3 }
  0xc4   : > { %vm378_vm6 = vcmp.lt.s32.totalorder %v377_v4, 0 }
  0xc5   : > { %v259_v5 = vsel %vm378_vm6, 0, %v377_v4 }
  0xc6   : > { %v260_v8 = vsub.s32 32, %v259_v5  ;;  %v264_v9 = vsub.s32 4294967266, %v259_v5  ;;  %v261_v10 = vshll.u32 %v252_v0, %v259_v5 }
  0xc8   : > { %v262_v12 = vshrl.u32 %v244_v7, %v260_v8  ;;  %v265_v13 = vadd.s32 127, %v264_v9 }
  0xca   : > { %v263_v14 = vor.u32 %v262_v12, %v261_v10  ;;  %v266_v15 = vshll.u32 %v265_v13, 23 }
  0xcc   : > { %v267_v16 = vor.u32 4788187, %v266_v15  ;;  %v270_v18 = vcvt.s32.f32 %v263_v14 }
  0xce   : > { %v268_v17 = vand.u32 2147483647, %v267_v16 }
  0xd0   : > { %v271_v19 = vmul.f32 %v270_v18, %v268_v17 }
  0xd2   : > { %v272_v20 = vxor.u32 2147483648, %v271_v19 }
  0xd4   : > { %v273_v22 = vsel %vm190_vm7, %v272_v20, %v271_v19 }
  0xd5   : > { %v276_v23 = vsel %vm189_vm8, %v587_v6, %v273_v22 }
  0xd6   : > { %434 = vcosq.f32 %v276_v23 }
  0xd7   : > { %436 = vsinq.f32 %v276_v23 }
  0xe3   : > { %v435_v28 = vpop.eup %434 }
  0xe4   : > { %v437_v29 = vpop.eup %436  ;;  %v288_v30 = vxor.u32 2147483648, %v435_v28 }
  0xe5   : > { %v285_v31 = vxor.u32 2147483648, %v437_v29 }
  0xe6   : > { %v289_v11 = vsel %vm287_vm9, %v288_v30, %v437_v29 }
  0xe7   : > { %v286_v32 = vsel %vm284_vm10, %v435_v28, %v285_v31 }
  0xe8   : > { %v290_v33 = vsel %vm283_vm11, %v286_v32, %v289_v11 }
  0xe9   : > { %v291_v34 = vsel %vm280_vm13, nan, %v290_v33 }
  0xea   : > { %293 = vst.msk [vmem:[%s161_s9] sm:$0xff] %vm292_vm12, %v291_v34 }
  0xeb   : > { %451 = shalt.err (!%p448_p3)
}
  0xec   : > { %s452_s27 = scalar_lea.hbm %s613_s19, 128  ;;  %s456_s30 = scalar_lea.hbm %s651_s3, 256 }
  0xed   : > { %p453_p4 = scmp.ne.s32.totalorder %s613_s19, %s452_s27  ;;  %p457_p9 = scmp.lt.s32.totalorder %s613_s19, %s651_s3 }
  0xee   : > { %p458_p10 = scmp.lt.s32.totalorder %s456_s30, %s452_s27 }
  0xef   : > { %p454_p7 = pnand %p453_p4, %p566_p5 }
  0xf0   : > { %p459_p11 = por %p458_p10, %p457_p9 }
  0xf1   : > { %p455_p8 = pneg %p454_p7 }
  0xf3   : > { %p460_p12 = pnand %p459_p11, %p455_p8 }
  0xf5   : > { %463 = shalt.err (!%p460_p12)
}
  0xf6   : > { %387 = dma.vmem_to_hbm [thread:$0]  (%p566_p5), %s309_s10, 128, %s613_s19, %s295_s16  }
  0xf7 PF: > { %p393_p13 = scmp.ge.s32.totalorder %s498_s15, 2  ;;  %s320_s6 = sand.u32 1, %s486_s12  }
  0xf8   : > { %s321_s7 = scalar_lea.sflag [#allocation3], %s320_s6 }
  0xf9   : > { %p390_p0 = pnand %p393_p13, %p570_p6 }
  0xfb   : > { %p391_p1 = pneg %p390_p0 }
  0xfd   : > { %481 = dma.done.wait (%p391_p1), %s321_s7, 128  }
  0xfe   : > { %483 = vsyncadd (%p391_p1), %s321_s7, 4294967168  ;;  %p13_p2 = scmp.ge.s32.totalorder %s553_s18, 4   ;;  %s654_s12 = smov %s490_s13 }
  0xff   : > { %s655_s13 = smov %s494_s14  ;;  %s656_s14 = smov %s564_s21 }
 0x100   : > { %s657_s15 = smov %s553_s18  ;;  %15 = sbr.rel (!%p13_p2) target bundleno = 3 (0x3), region = 67 }
 0x105   :  { %326 = vsyncpa [#allocation3], 1 }
 0x106   :  { %328 = vsyncpa [#allocation3 + $0x1], 1 }

</bundles_post_ra>
